<compile_context>
chip_gen: v5e
topology: v5e:2x2
jax: 0.10.0
libtpu: 0.0.40
codegen_flags: <defaults>
</compile_context>

<pallas_src>
import functools
import math

import jax
import jax.numpy as jnp
from jax.experimental import pallas as pl
from jax.experimental.pallas import tpu as pltpu


def _pos_enc_kernel(x_ref, pe_ref, o_ref, *, scale, batch):
    # x_ref, o_ref: (ts, B*D) lane-dense VMEM blocks; pe_ref: (ts, D).
    # Compute in f32 (covers bf16 I/O; v5e has no bf16 VPU), cast back at the store.
    x = x_ref[...].astype(jnp.float32)
    pe = pe_ref[...].astype(jnp.float32)
    if batch > 1:
        # Row layout of x is [b0:d0..dD-1 | b1:d0..dD-1 | ...], so repeating pe
        # along lanes lines it up with every batch's D-chunk.
        pe = jnp.tile(pe, (1, batch))
    o_ref[...] = (x * scale + pe).astype(o_ref.dtype)


def make_pe_buffer(d_model: int, max_len: int = 42) -> jnp.ndarray:
    """Deterministic sinusoidal PE buffer, shape (max_len, d_model), float32."""
    assert d_model % 2 == 0, "d_model must be even for the sin/cos interleave"
    position = jnp.arange(max_len, dtype=jnp.float32)[:, None]                # (L, 1)
    div_term = jnp.exp(
        jnp.arange(0, d_model, 2, dtype=jnp.float32) * (-math.log(10000.0) / d_model)
    )                                                                         # (D/2,)
    pe = jnp.zeros((max_len, d_model), dtype=jnp.float32)
    pe = pe.at[:, 0::2].set(jnp.sin(position * div_term))
    pe = pe.at[:, 1::2].set(jnp.cos(position * div_term))
    return pe                                                                 # (L, D)


def _round_up(v: int, m: int) -> int:
    return ((v + m - 1) // m) * m


def _vmem_budget():
    """Returns (vmem_limit_bytes, live_set_budget_bytes); conservative fallback."""
    try:
        cap = int(pltpu.get_tpu_info().vmem_capacity_bytes)
    except Exception:
        cap = 64 * 1024 * 1024                    # v7x-sized fallback
    limit = min(cap // 2, 64 * 1024 * 1024)       # 32 MiB on v7x, 64 MiB on v5e/v6e
    budget = (limit * 5) // 8                     # headroom for pipelining/regalloc
    return limit, budget


def _choose_tile_rows(s_pad: int, B: int, D: int, itemsize: int, budget: int) -> int:
    """Seq-tile rows: multiple of 8, full live set within budget, >=2 grid steps."""
    # Double-buffered live set per grid step: 2 buffers x (x + out + pe) blocks.
    bytes_per_row = itemsize * (2 * B * D + D)
    rows = budget // (2 * max(bytes_per_row, 1))
    rows = max(8, (rows // 8) * 8)
    rows = min(rows, s_pad)
    # v7x megacore: keep >= 2 steps on the "parallel" axis so both TCs stream.
    if s_pad > 8 and pl.cdiv(s_pad, rows) < 2:
        rows = max(8, _round_up(pl.cdiv(s_pad, 2), 8))
    return rows


def positional_encoding(x: jnp.ndarray, pe: jnp.ndarray, d_model: int) -> jnp.ndarray:
    """x: (S, B, D); pe: (max_len, D).  Returns x*sqrt(d_model) + pe[:S] (eval-mode dropout)."""
    S, B, D = x.shape
    max_len, pe_d = pe.shape
    if S > max_len:
        raise ValueError(f"seq_len {S} exceeds max_len {max_len} of the PE buffer")
    if pe_d != D:
        raise ValueError(f"pe d_model {pe_d} != x d_model {D}")

    scale = float(math.sqrt(d_model))

    # Cast pe once to x's dtype (halves pe VMEM/HBM cost for bf16 inputs; the
    # rounding error is below the output cast anyway).
    pe = pe.astype(x.dtype)

    # Fold batch into the lane dim (free for a row-major (S, B, D) array):
    # lane-dense blocks, contiguous per-step DMA, B x fewer grid steps.
    x2 = x.reshape(S, B * D)

    # Pad seq rows up to a sublane multiple so every block shape satisfies the
    # (8,128) rule for both x2 (S_pad, B*D) and pe (max_len, D).
    s_pad = _round_up(S, 8)
    if s_pad != S:
        x2 = jnp.pad(x2, ((0, s_pad - S), (0, 0)))

    vmem_limit, budget = _vmem_budget()
    ts = _choose_tile_rows(s_pad, B, D, jnp.dtype(x.dtype).itemsize, budget)
    grid = (pl.cdiv(s_pad, ts),)

    kernel = functools.partial(_pos_enc_kernel, scale=scale, batch=B)
    out2 = pl.pallas_call(
        kernel,
        out_shape=jax.ShapeDtypeStruct((s_pad, B * D), x.dtype),
        grid_spec=pltpu.PrefetchScalarGridSpec(
            num_scalar_prefetch=0,
            grid=grid,
            in_specs=[
                # x: one lane-dense (ts, B*D) slab per seq tile.
                pl.BlockSpec((ts, B * D), lambda i: (i, 0)),
                # pe: (ts, D) tile of the full (max_len, D) buffer; an edge tile
                # near max_len is padded by Pallas (padded values only pair with
                # masked / later-discarded output rows, no reductions here).
                pl.BlockSpec((ts, D), lambda i: (i, 0)),
            ],
            out_specs=pl.BlockSpec((ts, B * D), lambda i: (i, 0)),
        ),
        # Pure elementwise update: write back into x2's buffer (caller should
        # donate x at the jit boundary so this aliases without a defensive copy).
        input_output_aliases={0: 0},
        compiler_params=pltpu.CompilerParams(
            dimension_semantics=("parallel",),
            vmem_limit_bytes=vmem_limit,
        ),
    )(x2, pe)

    return out2[:S].reshape(S, B, D)


if __name__ == "__main__":
    d_model = 32
    max_len = 42
    seq_len = 8
    batch = 2

    key = jax.random.PRNGKey(0)
    x = jax.random.normal(key, (seq_len, batch, d_model), dtype=jnp.float32)
    pe = make_pe_buffer(d_model, max_len)

    # Pure-JAX reference (eval-mode dropout == identity), computed BEFORE the
    # kernel call because x is donated below.
    ref = x * jnp.float32(math.sqrt(d_model)) + pe[:seq_len][:, None, :]
    ref = jax.block_until_ready(ref)

    # Donate x so input_output_aliases={0: 0} really aliases (no defensive copy).
    pos_enc = jax.jit(positional_encoding, static_argnums=(2,), donate_argnums=(0,))
    out = pos_enc(x, pe, d_model)
    out = jax.block_until_ready(out)

    assert out.shape == (seq_len, batch, d_model)
    assert out.dtype == ref.dtype
    assert jnp.allclose(out, ref, atol=1e-5, rtol=1e-5)

    print("KERNEL_OK")
</pallas_src>

<mosaic_0001>
module attributes {stable_mosaic.version = 11 : i64} {
  func.func @_pos_enc_kernel(%arg0: i32, %arg1: memref<8x64xf32, #tpu.memory_space<vmem>>, %arg2: memref<8x32xf32, #tpu.memory_space<vmem>>, %arg3: memref<8x64xf32, #tpu.memory_space<vmem>>) attributes {dimension_semantics = [#tpu.dimension_semantics<parallel>], iteration_bounds = array<i64: 1>, scalar_prefetch = 0 : i64, scratch_operands = 0 : i64, tpu.core_type = #tpu.core_type<tc>, window_params = [{transform_indices = @transform_0, window_bounds = array<i64: 8, 64>}, {transform_indices = @transform_1, window_bounds = array<i64: 8, 32>}, {transform_indices = @transform_2, window_bounds = array<i64: 8, 64>}]} {
    %c0 = arith.constant 0 : index
    %c0_0 = arith.constant 0 : index
    %0 = vector.load %arg1[%c0, %c0_0] : memref<8x64xf32, #tpu.memory_space<vmem>>, vector<8x64xf32>
    %c0_1 = arith.constant 0 : index
    %c0_2 = arith.constant 0 : index
    %1 = vector.load %arg2[%c0_1, %c0_2] : memref<8x32xf32, #tpu.memory_space<vmem>>, vector<8x32xf32>
    %2 = tpu.concatenate %1, %1 in 1 : vector<8x32xf32>, vector<8x32xf32> -> vector<8x64xf32>
    %cst = arith.constant 5.65685415 : f32
    %3 = vector.broadcast %cst : f32 to vector<8x64xf32>
    %4 = arith.mulf %0, %3 : vector<8x64xf32>
    %5 = arith.addf %4, %2 : vector<8x64xf32>
    %c0_3 = arith.constant 0 : index
    %c0_4 = arith.constant 0 : index
    %6 = vector.load %arg3[%c0_3, %c0_4] : memref<8x64xf32, #tpu.memory_space<vmem>>, vector<8x64xf32>
    tpu.vector_store %arg3[%c0_3, %c0_4], %5 {strides = array<i32>} : memref<8x64xf32, #tpu.memory_space<vmem>>, vector<8x64xf32>,
    return
  }
  func.func @transform_0(%arg0: i32) -> (i32, i32) {
    %c0_i32 = arith.constant 0 : i32
    %c0_i32_0 = arith.constant 0 : i32
    return %arg0, %c0_i32 : i32, i32
  }
  func.func @transform_1(%arg0: i32) -> (i32, i32) {
    %c0_i32 = arith.constant 0 : i32
    %c0_i32_0 = arith.constant 0 : i32
    return %arg0, %c0_i32 : i32, i32
  }
  func.func @transform_2(%arg0: i32) -> (i32, i32) {
    %c0_i32 = arith.constant 0 : i32
    %c0_i32_0 = arith.constant 0 : i32
    return %arg0, %c0_i32 : i32, i32
  }
}

</mosaic_0001>

<bundles_post_ra>
// kernel: positional_encoding.1
= control target key start
LH: loop header
LB: loop body
LE: loop exit
PB: predicated region body
PF: predicated region fallthrough
CT: control target
= control target key end

     0   :  { %s28_s11 = smov 32   ;;  %vm17_vm0 = vcmask 261120   ;;  %vm21_vm1 = vcmask 523264   ;;  %s53_s1 = inlined_call_operand.vmem [shape: f32[42,32], index: 1, kind: input, shape index: {}]   ;;  %s54_s0 = inlined_call_operand.vmem [shape: f32[8,64], index: 0, kind: input, shape index: {}, may-alias: {0,2}]   ;;  %s55_s2 = inlined_call_operand.vmem [shape: f32[8,64], index: 2, kind: output, shape index: {}, may-alias: {0,2}]  }
   0x1   :  { %v12_v0 = vld [vmem:[%s53_s1] sm:$0xff] }
   0x2   :  { %14 = vrot.lane.b32.xlu0 %v12_v0, %s28_s11  ;;  %v11_v1 = vld [vmem:[%s54_s0] sm:$0xff] }
   0x3   :  { %v19_v2 = vmul.f32 5.656854, %v11_v1 }
  0x74   :  { %v15_v3 = vpop.permute.xlu0 %14 }
  0x75   :  { %v18_v4 = vsel %vm17_vm0, %v12_v0, %v15_v3 }
  0x76   :  { %v20_v5 = vadd.f32 %v19_v2, %v18_v4 }
  0x78   :  { %22 = vst.msk [vmem:[%s55_s2] sm:$0xff] %vm21_vm1, %v20_v5 }

</bundles_post_ra>
